<compile_context>
chip_gen: v7x
topology: tpu7x:2x2x1
jax: 0.10.0
libtpu: 0.0.40
codegen_flags: <defaults>
</compile_context>

<pallas_src>
import functools

import jax
import jax.numpy as jnp
from jax import lax
from jax.experimental import pallas as pl
from jax.experimental.pallas import tpu as pltpu

EPS = 1e-5


# ---------------------------------------------------------------------------
# in-kernel helpers
# ---------------------------------------------------------------------------
def _conv3_ncl(h_f32, w_ref):
    """k=3, pad=1 Conv1d along the last (L / lane) axis in (TN, C, L) layout.

    h_f32 : (TN, C, L) f32 activations (current batch tile)
    w_ref : (3, C, C) VMEM ref with w_ref[k] = W_pt[:, :, k]  (Cout, Cin);
            tap k pairs with the input at position l - 1 + k.

    Three per-tap batched MXU matmuls with f32 accumulation.  The shifted
    copies are built with lane-axis slices + one zero column instead of a
    (rows, 3C) im2col buffer.
    """
    tn, c, l = h_f32.shape
    cdt = w_ref.dtype
    hc = h_f32.astype(cdt)
    zcol = jnp.zeros((tn, c, 1), cdt)
    h_m1 = jnp.concatenate([zcol, hc[:, :, :-1]], axis=2)      # input at l-1
    h_p1 = jnp.concatenate([hc[:, :, 1:], zcol], axis=2)       # input at l+1

    def tap(w2d, xs):
        wb = jnp.broadcast_to(w2d, (tn, c, c))                 # (TN, Cout, Cin)
        return lax.dot_general(                                # -> (TN, Cout, L)
            wb, xs,
            dimension_numbers=(((2,), (1,)), ((0,), (0,))),
            preferred_element_type=jnp.float32)

    return tap(w_ref[0], h_m1) + tap(w_ref[1], hc) + tap(w_ref[2], h_p1)


def _channel_stats(y_f32):
    """Per-channel (sum, sum-of-squares) partials of a (TN, C, L) f32 tile."""
    c = y_f32.shape[1]
    ssum = jnp.sum(y_f32, axis=(0, 2)).reshape(1, c, 1)
    ssq = jnp.sum(y_f32 * y_f32, axis=(0, 2)).reshape(1, c, 1)
    return ssum, ssq


# ---------------------------------------------------------------------------
# kernels (one grid step == one batch tile; every grid axis is "parallel")
# ---------------------------------------------------------------------------
def _conv_stats_kernel(x_ref, w_ref, y_ref, ssum_ref, ssq_ref):
    y = _conv3_ncl(x_ref[...], w_ref)                          # conv1 (f32 accum)
    y_ref[...] = y.astype(y_ref.dtype)                         # bf16 intermediate
    s, q = _channel_stats(y)                                   # stats on the f32 values
    ssum_ref[...] = s
    ssq_ref[...] = q


def _bn_relu_conv_stats_kernel(y1_ref, scale_ref, shift_ref, w_ref,
                               y2_ref, ssum_ref, ssq_ref):
    h = y1_ref[...].astype(jnp.float32) * scale_ref[...] + shift_ref[...]
    h = jnp.maximum(h, 0.0)                                    # bn1 + ReLU (f32)
    y = _conv3_ncl(h, w_ref)                                   # conv2 (f32 accum)
    y2_ref[...] = y.astype(y2_ref.dtype)
    s, q = _channel_stats(y)
    ssum_ref[...] = s
    ssq_ref[...] = q


def _bn_add_relu_kernel(y2_ref, scale_ref, shift_ref, x_ref, o_ref):
    out = y2_ref[...].astype(jnp.float32) * scale_ref[...] + shift_ref[...]
    out = out + x_ref[...]                                     # identity skip (f32)
    o_ref[...] = jnp.maximum(out, 0.0).astype(o_ref.dtype)     # final ReLU


# ---------------------------------------------------------------------------
# wrapper
# ---------------------------------------------------------------------------
def _round_up(v, m):
    return ((v + m - 1) // m) * m


def _vmem_limit_bytes():
    """Generation-aware scoped-VMEM request (v5e/v6e: 128 MiB physical, v7x: 64 MiB)."""
    cap = 64 << 20
    try:
        cap = int(pltpu.get_tpu_info().vmem_capacity_bytes)
    except Exception:
        pass
    return min((cap * 3) // 4, 96 << 20)


def _pick_tile_n(n, c, l, interm_bytes, budget_bytes):
    """Largest divisor of n whose per-grid-step working set fits `budget_bytes`.

    Per-sample working set of the heaviest call (call B):
      y1-in / y2-out blocks, each double-buffered : 2 * 2 * C*L*interm_bytes
      f32 bn/relu temp + f32 conv accumulator     : 2 * C*L*4
      compute-dtype center + two shifted copies   : 3 * C*L*2
      per-sample broadcast of the three taps      : 3 * C*C*2
    """
    # TODO(synk): add an L-axis grid dimension (1-element halo) plus masked
    # handling of non-divisor batch sizes; currently the batch tile must divide N.
    per_sample = c * l * (4 * interm_bytes + 8 + 6) + 3 * c * c * 2
    best = 1
    for d in range(1, n + 1):
        if n % d == 0 and d * per_sample <= budget_bytes:
            best = d
    return best


def _pack_conv_weight(w, c, cp, dtype):
    """PyTorch (Cout, Cin, 3) -> (3, Cout_p, Cin_p); tap k pairs with x[l-1+k]."""
    wt = jnp.transpose(w, (2, 0, 1))
    wt = jnp.pad(wt, ((0, 0), (0, cp - c), (0, cp - c)))
    return wt.astype(dtype)


def _bn_scale_shift(ssum_p, ssq_p, gamma, beta, count, c, cp):
    """Fold biased batch statistics + affine params into per-channel scale/shift."""
    ssum = jnp.sum(ssum_p, axis=0)                             # (Cp, 1)
    ssq = jnp.sum(ssq_p, axis=0)
    mean = ssum / count
    # TODO(synk): one-pass variance can lose precision for very large N*L / large
    # activation means; switch to centered partial sums if tolerances tighten.
    var = jnp.maximum(ssq / count - mean * mean, 0.0)
    g = jnp.pad(gamma.astype(jnp.float32), (0, cp - c)).reshape(cp, 1)
    b = jnp.pad(beta.astype(jnp.float32), (0, cp - c)).reshape(cp, 1)
    scale = g * lax.rsqrt(var + EPS)
    shift = b - mean * scale
    return scale.reshape(1, cp, 1), shift.reshape(1, cp, 1)


def residual_block(x_ncl, w1, g1, b1, w2, g2, b2, *,
                   compute_dtype=jnp.bfloat16, interm_dtype=jnp.bfloat16):
    """Forward pass of ResidualBlock (stride=1, downsample=None, training-mode BN).

    x_ncl : (N, C, L) float32 in the native PyTorch layout.
    w1/w2 : (Cout, Cin, 3) conv weights (bias=False).  g*/b*: (C,) BN affine params.
    """
    N, C, L = x_ncl.shape
    Cp = _round_up(C, 8)                       # sublane quantum only -- NOT 128 lanes

    x = x_ncl.astype(jnp.float32)
    if Cp != C:                                # no-op for channel counts already %8==0
        x = jnp.pad(x, ((0, 0), (0, Cp - C), (0, 0)))
    w1p = _pack_conv_weight(w1, C, Cp, compute_dtype)
    w2p = _pack_conv_weight(w2, C, Cp, compute_dtype)

    interm_bytes = jnp.dtype(interm_dtype).itemsize
    vmem_limit = _vmem_limit_bytes()
    TN = _pick_tile_n(N, Cp, L, interm_bytes, vmem_limit // 2)
    G = N // TN
    count = float(N * L)

    act_spec = pl.BlockSpec((TN, Cp, L), lambda i: (i, 0, 0))   # batch-tiled activations
    w_spec = pl.BlockSpec((3, Cp, Cp), lambda i: (0, 0, 0))     # weights resident in VMEM
    vec_spec = pl.BlockSpec((1, Cp, 1), lambda i: (0, 0, 0))    # resident scale/shift
    stat_spec = pl.BlockSpec((1, Cp, 1), lambda i: (i, 0, 0))   # per-step stat partials

    interm_shape = jax.ShapeDtypeStruct((N, Cp, L), interm_dtype)
    out_shape = jax.ShapeDtypeStruct((N, Cp, L), jnp.float32)
    stat_shape = jax.ShapeDtypeStruct((G, Cp, 1), jnp.float32)

    cparams = pltpu.CompilerParams(dimension_semantics=("parallel",),
                                   vmem_limit_bytes=vmem_limit)

    conv_flops = 2 * 3 * N * L * Cp * Cp
    act_elems = N * Cp * L

    # --- call A: conv1 + per-tile batch stats --------------------------------
    y1, s1, q1 = pl.pallas_call(
        _conv_stats_kernel,
        out_shape=(interm_shape, stat_shape, stat_shape),
        grid_spec=pltpu.PrefetchScalarGridSpec(
            num_scalar_prefetch=0, grid=(G,),
            in_specs=[act_spec, w_spec],
            out_specs=[act_spec, stat_spec, stat_spec]),
        compiler_params=cparams,
        cost_estimate=pl.CostEstimate(flops=conv_flops, transcendentals=0,
                                      bytes_accessed=act_elems * (4 + interm_bytes)),
    )(x, w1p)
    scale1, shift1 = _bn_scale_shift(s1, q1, g1, b1, count, C, Cp)

    # --- call B: bn1 + ReLU + conv2 + per-tile batch stats --------------------
    y2, s2, q2 = pl.pallas_call(
        _bn_relu_conv_stats_kernel,
        out_shape=(interm_shape, stat_shape, stat_shape),
        grid_spec=pltpu.PrefetchScalarGridSpec(
            num_scalar_prefetch=0, grid=(G,),
            in_specs=[act_spec, vec_spec, vec_spec, w_spec],
            out_specs=[act_spec, stat_spec, stat_spec]),
        compiler_params=cparams,
        cost_estimate=pl.CostEstimate(flops=conv_flops, transcendentals=0,
                                      bytes_accessed=act_elems * 2 * interm_bytes),
    )(y1, scale1, shift1, w2p)
    scale2, shift2 = _bn_scale_shift(s2, q2, g2, b2, count, C, Cp)

    # --- call C: bn2 + identity skip + ReLU -----------------------------------
    out = pl.pallas_call(
        _bn_add_relu_kernel,
        out_shape=out_shape,
        grid_spec=pltpu.PrefetchScalarGridSpec(
            num_scalar_prefetch=0, grid=(G,),
            in_specs=[act_spec, vec_spec, vec_spec, act_spec],
            out_specs=act_spec),
        compiler_params=cparams,
        cost_estimate=pl.CostEstimate(flops=4 * N * L * Cp, transcendentals=0,
                                      bytes_accessed=act_elems * (8 + interm_bytes)),
    )(y2, scale2, shift2, x)

    if Cp != C:
        out = out[:, :C, :]                    # drop the (< 8) padded channels
    return out
    # TODO(synk): downsample branch / stride != 1 not implemented (module default
    # is downsample=None, stride=1); BN running-stat buffers are not updated.


# ---------------------------------------------------------------------------
# plain-JAX reference (training-mode BN).  `interm_dtype` models the storage
# precision of the inter-stage activations (the kernel stores y1/y2 in bf16 by
# default); pass jnp.float32 to both sides for a full-precision check.
# ---------------------------------------------------------------------------
def reference(x, w1, g1, b1, w2, g2, b2, *,
              compute_dtype=jnp.bfloat16, interm_dtype=jnp.bfloat16):
    def conv(h, w):
        return lax.conv_general_dilated(
            h.astype(compute_dtype), w.astype(compute_dtype),
            window_strides=(1,), padding=[(1, 1)],
            dimension_numbers=('NCH', 'OIH', 'NCH'),
            preferred_element_type=jnp.float32)

    def bn(y_stats, y_apply, g, b):
        mean = jnp.mean(y_stats, axis=(0, 2), keepdims=True)
        var = jnp.mean((y_stats - mean) ** 2, axis=(0, 2), keepdims=True)
        return ((y_apply - mean) * lax.rsqrt(var + EPS) * g[None, :, None]
                + b[None, :, None])

    y1 = conv(x, w1)
    y1q = y1.astype(interm_dtype).astype(jnp.float32)          # storage precision of y1
    h = jax.nn.relu(bn(y1, y1q, g1, b1))
    y2 = conv(h, w2)
    y2q = y2.astype(interm_dtype).astype(jnp.float32)          # storage precision of y2
    return jax.nn.relu(bn(y2, y2q, g2, b2) + x)


if __name__ == "__main__":
    N, C, L = 2, 4, 16    # batch, channels (in == out), sequence length

    key = jax.random.PRNGKey(0)
    kx, k1, k2, kg1, kb1, kg2, kb2 = jax.random.split(key, 7)

    x = jax.random.normal(kx, (N, C, L), dtype=jnp.float32)
    w1 = jax.random.normal(k1, (C, C, 3), dtype=jnp.float32) * 0.2    # conv1.weight
    w2 = jax.random.normal(k2, (C, C, 3), dtype=jnp.float32) * 0.2    # conv2.weight
    g1 = 1.0 + 0.1 * jax.random.normal(kg1, (C,), dtype=jnp.float32)  # bn1.weight
    b1 = 0.1 * jax.random.normal(kb1, (C,), dtype=jnp.float32)        # bn1.bias
    g2 = 1.0 + 0.1 * jax.random.normal(kg2, (C,), dtype=jnp.float32)  # bn2.weight
    b2 = 0.1 * jax.random.normal(kb2, (C,), dtype=jnp.float32)        # bn2.bias

    # Default configuration: bf16 inter-stage activations (the perf choice).
    fwd = jax.jit(residual_block)
    out = jax.block_until_ready(fwd(x, w1, g1, b1, w2, g2, b2))
    ref = reference(x, w1, g1, b1, w2, g2, b2)
    assert out.shape == (N, C, L)
    # bf16 MXU inputs + bf16-stored intermediates on both sides; residual error is
    # accumulation-order / one-ulp rounding-boundary level.
    assert jnp.allclose(out, ref, rtol=1e-2, atol=1e-2), "mismatch (bf16 intermediates)"

    # Full-precision intermediates: tighter check of the kernel algorithm itself.
    fwd32 = jax.jit(functools.partial(residual_block, interm_dtype=jnp.float32))
    out32 = jax.block_until_ready(fwd32(x, w1, g1, b1, w2, g2, b2))
    ref32 = reference(x, w1, g1, b1, w2, g2, b2, interm_dtype=jnp.float32)
    assert jnp.allclose(out32, ref32, rtol=5e-3, atol=5e-3), "mismatch (f32 intermediates)"

    print("KERNEL_OK")
</pallas_src>

<mosaic_0001>
module attributes {stable_mosaic.version = 11 : i64} {
  func.func @_conv_stats_kernel(%arg0: i32, %arg1: memref<2x8x16xf32, #tpu.memory_space<vmem>>, %arg2: memref<3x8x8xbf16, #tpu.memory_space<vmem>>, %arg3: memref<2x8x16xbf16, #tpu.memory_space<vmem>>, %arg4: memref<1x8x1xf32, #tpu.memory_space<vmem>>, %arg5: memref<1x8x1xf32, #tpu.memory_space<vmem>>) attributes {dimension_semantics = [#tpu.dimension_semantics<parallel>], iteration_bounds = array<i64: 1>, scalar_prefetch = 0 : i64, scratch_operands = 0 : i64, tpu.core_type = #tpu.core_type<tc>, window_params = [{transform_indices = @transform_0, window_bounds = array<i64: 2, 8, 16>}, {pipeline_mode = #tpu.pipeline_mode<synchronous>, transform_indices = @transform_1, window_bounds = array<i64: 3, 8, 8>}, {transform_indices = @transform_2, window_bounds = array<i64: 2, 8, 16>}, {transform_indices = @transform_3, window_bounds = array<i64: 1, 8, 1>}, {transform_indices = @transform_4, window_bounds = array<i64: 1, 8, 1>}]} {
    %c0 = arith.constant 0 : index
    %c0_0 = arith.constant 0 : index
    %c0_1 = arith.constant 0 : index
    %0 = vector.load %arg1[%c0, %c0_0, %c0_1] : memref<2x8x16xf32, #tpu.memory_space<vmem>>, vector<2x8x16xf32>
    %1 = arith.truncf %0 : vector<2x8x16xf32> to vector<2x8x16xbf16>
    %cst = arith.constant 0.000000e+00 : bf16
    %2 = vector.broadcast %cst : bf16 to vector<2x8x1xbf16>
    %3 = vector.extract_strided_slice %1 {offsets = [0, 0, 0], sizes = [2, 8, 15], strides = [1, 1, 1]} : vector<2x8x16xbf16> to vector<2x8x15xbf16>
    %4 = tpu.concatenate %2, %3 in 2 : vector<2x8x1xbf16>, vector<2x8x15xbf16> -> vector<2x8x16xbf16>
    %5 = vector.extract_strided_slice %1 {offsets = [0, 0, 1], sizes = [2, 8, 15], strides = [1, 1, 1]} : vector<2x8x16xbf16> to vector<2x8x15xbf16>
    %6 = tpu.concatenate %5, %2 in 2 : vector<2x8x15xbf16>, vector<2x8x1xbf16> -> vector<2x8x16xbf16>
    %c0_2 = arith.constant 0 : index
    %c0_3 = arith.constant 0 : index
    %c0_4 = arith.constant 0 : index
    %7 = vector.load %arg2[%c0_2, %c0_3, %c0_4] : memref<3x8x8xbf16, #tpu.memory_space<vmem>>, vector<1x8x8xbf16>
    %8 = vector.shape_cast %7 : vector<1x8x8xbf16> to vector<8x8xbf16>
    %9 = vector.shape_cast %8 : vector<8x8xbf16> to vector<1x8x8xbf16>
    %10 = vector.broadcast %9 : vector<1x8x8xbf16> to vector<2x8x8xbf16>
    %cst_5 = arith.constant dense<0.000000e+00> : vector<2x8x16xf32>
    %11 = tpu.matmul %10, %4, %cst_5 {dimension_numbers = #tpu.dot_dimension_numbers<[2], [1], [1], [2], [0, 0, 0, 1, 1, 2], [0], [0]>} : vector<2x8x8xbf16>, vector<2x8x16xbf16>, vector<2x8x16xf32> -> vector<2x8x16xf32>
    %c1 = arith.constant 1 : index
    %c0_6 = arith.constant 0 : index
    %c0_7 = arith.constant 0 : index
    %12 = vector.load %arg2[%c1, %c0_6, %c0_7] : memref<3x8x8xbf16, #tpu.memory_space<vmem>>, vector<1x8x8xbf16>
    %13 = vector.shape_cast %12 : vector<1x8x8xbf16> to vector<8x8xbf16>
    %14 = vector.shape_cast %13 : vector<8x8xbf16> to vector<1x8x8xbf16>
    %15 = vector.broadcast %14 : vector<1x8x8xbf16> to vector<2x8x8xbf16>
    %cst_8 = arith.constant dense<0.000000e+00> : vector<2x8x16xf32>
    %16 = tpu.matmul %15, %1, %cst_8 {dimension_numbers = #tpu.dot_dimension_numbers<[2], [1], [1], [2], [0, 0, 0, 1, 1, 2], [0], [0]>} : vector<2x8x8xbf16>, vector<2x8x16xbf16>, vector<2x8x16xf32> -> vector<2x8x16xf32>
    %17 = arith.addf %11, %16 : vector<2x8x16xf32>
    %c2 = arith.constant 2 : index
    %c0_9 = arith.constant 0 : index
    %c0_10 = arith.constant 0 : index
    %18 = vector.load %arg2[%c2, %c0_9, %c0_10] : memref<3x8x8xbf16, #tpu.memory_space<vmem>>, vector<1x8x8xbf16>
    %19 = vector.shape_cast %18 : vector<1x8x8xbf16> to vector<8x8xbf16>
    %20 = vector.shape_cast %19 : vector<8x8xbf16> to vector<1x8x8xbf16>
    %21 = vector.broadcast %20 : vector<1x8x8xbf16> to vector<2x8x8xbf16>
    %cst_11 = arith.constant dense<0.000000e+00> : vector<2x8x16xf32>
    %22 = tpu.matmul %21, %6, %cst_11 {dimension_numbers = #tpu.dot_dimension_numbers<[2], [1], [1], [2], [0, 0, 0, 1, 1, 2], [0], [0]>} : vector<2x8x8xbf16>, vector<2x8x16xbf16>, vector<2x8x16xf32> -> vector<2x8x16xf32>
    %23 = arith.addf %17, %22 : vector<2x8x16xf32>
    %24 = arith.truncf %23 : vector<2x8x16xf32> to vector<2x8x16xbf16>
    %c0_12 = arith.constant 0 : index
    %c0_13 = arith.constant 0 : index
    %c0_14 = arith.constant 0 : index
    %25 = vector.load %arg3[%c0_12, %c0_13, %c0_14] : memref<2x8x16xbf16, #tpu.memory_space<vmem>>, vector<2x8x16xbf16>
    tpu.vector_store %arg3[%c0_12, %c0_13, %c0_14], %24 {strides = array<i32>} : memref<2x8x16xbf16, #tpu.memory_space<vmem>>, vector<2x8x16xbf16>,
    %cst_15 = arith.constant dense<0.000000e+00> : vector<8xf32>
    %26 = vector.multi_reduction <add>, %23, %cst_15 [0, 2] : vector<2x8x16xf32> to vector<8xf32>
    %27 = vector.shape_cast %26 : vector<8xf32> to vector<1x8x1xf32>
    %28 = arith.mulf %23, %23 : vector<2x8x16xf32>
    %cst_16 = arith.constant dense<0.000000e+00> : vector<8xf32>
    %29 = vector.multi_reduction <add>, %28, %cst_16 [0, 2] : vector<2x8x16xf32> to vector<8xf32>
    %30 = vector.shape_cast %29 : vector<8xf32> to vector<1x8x1xf32>
    %c0_17 = arith.constant 0 : index
    %c0_18 = arith.constant 0 : index
    %c0_19 = arith.constant 0 : index
    %31 = vector.load %arg4[%c0_17, %c0_18, %c0_19] : memref<1x8x1xf32, #tpu.memory_space<vmem>>, vector<1x8x1xf32>
    tpu.vector_store %arg4[%c0_17, %c0_18, %c0_19], %27 {strides = array<i32>} : memref<1x8x1xf32, #tpu.memory_space<vmem>>, vector<1x8x1xf32>,
    %c0_20 = arith.constant 0 : index
    %c0_21 = arith.constant 0 : index
    %c0_22 = arith.constant 0 : index
    %32 = vector.load %arg5[%c0_20, %c0_21, %c0_22] : memref<1x8x1xf32, #tpu.memory_space<vmem>>, vector<1x8x1xf32>
    tpu.vector_store %arg5[%c0_20, %c0_21, %c0_22], %30 {strides = array<i32>} : memref<1x8x1xf32, #tpu.memory_space<vmem>>, vector<1x8x1xf32>,
    return
  }
  func.func @transform_0(%arg0: i32) -> (i32, i32, i32) {
    %c0_i32 = arith.constant 0 : i32
    %c0_i32_0 = arith.constant 0 : i32
    %c0_i32_1 = arith.constant 0 : i32
    return %arg0, %c0_i32, %c0_i32_0 : i32, i32, i32
  }
  func.func @transform_1(%arg0: i32) -> (i32, i32, i32) {
    %c0_i32 = arith.constant 0 : i32
    %c0_i32_0 = arith.constant 0 : i32
    %c0_i32_1 = arith.constant 0 : i32
    %c0_i32_2 = arith.constant 0 : i32
    return %c0_i32, %c0_i32_0, %c0_i32_1 : i32, i32, i32
  }
  func.func @transform_2(%arg0: i32) -> (i32, i32, i32) {
    %c0_i32 = arith.constant 0 : i32
    %c0_i32_0 = arith.constant 0 : i32
    %c0_i32_1 = arith.constant 0 : i32
    return %arg0, %c0_i32, %c0_i32_0 : i32, i32, i32
  }
  func.func @transform_3(%arg0: i32) -> (i32, i32, i32) {
    %c0_i32 = arith.constant 0 : i32
    %c0_i32_0 = arith.constant 0 : i32
    %c0_i32_1 = arith.constant 0 : i32
    return %arg0, %c0_i32, %c0_i32_0 : i32, i32, i32
  }
  func.func @transform_4(%arg0: i32) -> (i32, i32, i32) {
    %c0_i32 = arith.constant 0 : i32
    %c0_i32_0 = arith.constant 0 : i32
    %c0_i32_1 = arith.constant 0 : i32
    return %arg0, %c0_i32, %c0_i32_0 : i32, i32, i32
  }
}

module attributes {stable_mosaic.version = 11 : i64} {
  func.func @_bn_add_relu_kernel(%arg0: i32, %arg1: memref<2x8x16xbf16, #tpu.memory_space<vmem>>, %arg2: memref<1x8x1xf32, #tpu.memory_space<vmem>>, %arg3: memref<1x8x1xf32, #tpu.memory_space<vmem>>, %arg4: memref<2x8x16xf32, #tpu.memory_space<vmem>>, %arg5: memref<2x8x16xf32, #tpu.memory_space<vmem>>) attributes {dimension_semantics = [#tpu.dimension_semantics<parallel>], iteration_bounds = array<i64: 1>, scalar_prefetch = 0 : i64, scratch_operands = 0 : i64, tpu.core_type = #tpu.core_type<tc>, window_params = [{transform_indices = @transform_0, window_bounds = array<i64: 2, 8, 16>}, {pipeline_mode = #tpu.pipeline_mode<synchronous>, transform_indices = @transform_1, window_bounds = array<i64: 1, 8, 1>}, {pipeline_mode = #tpu.pipeline_mode<synchronous>, transform_indices = @transform_2, window_bounds = array<i64: 1, 8, 1>}, {transform_indices = @transform_3, window_bounds = array<i64: 2, 8, 16>}, {transform_indices = @transform_4, window_bounds = array<i64: 2, 8, 16>}]} {
    %c0 = arith.constant 0 : index
    %c0_0 = arith.constant 0 : index
    %c0_1 = arith.constant 0 : index
    %0 = vector.load %arg1[%c0, %c0_0, %c0_1] : memref<2x8x16xbf16, #tpu.memory_space<vmem>>, vector<2x8x16xbf16>
    %1 = arith.extf %0 : vector<2x8x16xbf16> to vector<2x8x16xf32>
    %c0_2 = arith.constant 0 : index
    %c0_3 = arith.constant 0 : index
    %c0_4 = arith.constant 0 : index
    %2 = vector.load %arg2[%c0_2, %c0_3, %c0_4] : memref<1x8x1xf32, #tpu.memory_space<vmem>>, vector<1x8x1xf32>
    %3 = vector.broadcast %2 : vector<1x8x1xf32> to vector<2x8x16xf32>
    %4 = arith.mulf %1, %3 : vector<2x8x16xf32>
    %c0_5 = arith.constant 0 : index
    %c0_6 = arith.constant 0 : index
    %c0_7 = arith.constant 0 : index
    %5 = vector.load %arg3[%c0_5, %c0_6, %c0_7] : memref<1x8x1xf32, #tpu.memory_space<vmem>>, vector<1x8x1xf32>
    %6 = vector.broadcast %5 : vector<1x8x1xf32> to vector<2x8x16xf32>
    %7 = arith.addf %4, %6 : vector<2x8x16xf32>
    %c0_8 = arith.constant 0 : index
    %c0_9 = arith.constant 0 : index
    %c0_10 = arith.constant 0 : index
    %8 = vector.load %arg4[%c0_8, %c0_9, %c0_10] : memref<2x8x16xf32, #tpu.memory_space<vmem>>, vector<2x8x16xf32>
    %9 = arith.addf %7, %8 : vector<2x8x16xf32>
    %cst = arith.constant 0.000000e+00 : f32
    %10 = vector.broadcast %cst : f32 to vector<2x8x16xf32>
    %11 = arith.maximumf %9, %10 : vector<2x8x16xf32>
    %c0_11 = arith.constant 0 : index
    %c0_12 = arith.constant 0 : index
    %c0_13 = arith.constant 0 : index
    %12 = vector.load %arg5[%c0_11, %c0_12, %c0_13] : memref<2x8x16xf32, #tpu.memory_space<vmem>>, vector<2x8x16xf32>
    tpu.vector_store %arg5[%c0_11, %c0_12, %c0_13], %11 {strides = array<i32>} : memref<2x8x16xf32, #tpu.memory_space<vmem>>, vector<2x8x16xf32>,
    return
  }
  func.func @transform_0(%arg0: i32) -> (i32, i32, i32) {
    %c0_i32 = arith.constant 0 : i32
    %c0_i32_0 = arith.constant 0 : i32
    %c0_i32_1 = arith.constant 0 : i32
    return %arg0, %c0_i32, %c0_i32_0 : i32, i32, i32
  }
  func.func @transform_1(%arg0: i32) -> (i32, i32, i32) {
    %c0_i32 = arith.constant 0 : i32
    %c0_i32_0 = arith.constant 0 : i32
    %c0_i32_1 = arith.constant 0 : i32
    %c0_i32_2 = arith.constant 0 : i32
    return %c0_i32, %c0_i32_0, %c0_i32_1 : i32, i32, i32
  }
  func.func @transform_2(%arg0: i32) -> (i32, i32, i32) {
    %c0_i32 = arith.constant 0 : i32
    %c0_i32_0 = arith.constant 0 : i32
    %c0_i32_1 = arith.constant 0 : i32
    %c0_i32_2 = arith.constant 0 : i32
    return %c0_i32, %c0_i32_0, %c0_i32_1 : i32, i32, i32
  }
  func.func @transform_3(%arg0: i32) -> (i32, i32, i32) {
    %c0_i32 = arith.constant 0 : i32
    %c0_i32_0 = arith.constant 0 : i32
    %c0_i32_1 = arith.constant 0 : i32
    return %arg0, %c0_i32, %c0_i32_0 : i32, i32, i32
  }
  func.func @transform_4(%arg0: i32) -> (i32, i32, i32) {
    %c0_i32 = arith.constant 0 : i32
    %c0_i32_0 = arith.constant 0 : i32
    %c0_i32_1 = arith.constant 0 : i32
    return %arg0, %c0_i32, %c0_i32_0 : i32, i32, i32
  }
}

module attributes {stable_mosaic.version = 11 : i64} {
  func.func @_bn_relu_conv_stats_kernel(%arg0: i32, %arg1: memref<2x8x16xbf16, #tpu.memory_space<vmem>>, %arg2: memref<1x8x1xf32, #tpu.memory_space<vmem>>, %arg3: memref<1x8x1xf32, #tpu.memory_space<vmem>>, %arg4: memref<3x8x8xbf16, #tpu.memory_space<vmem>>, %arg5: memref<2x8x16xbf16, #tpu.memory_space<vmem>>, %arg6: memref<1x8x1xf32, #tpu.memory_space<vmem>>, %arg7: memref<1x8x1xf32, #tpu.memory_space<vmem>>) attributes {dimension_semantics = [#tpu.dimension_semantics<parallel>], iteration_bounds = array<i64: 1>, scalar_prefetch = 0 : i64, scratch_operands = 0 : i64, tpu.core_type = #tpu.core_type<tc>, window_params = [{transform_indices = @transform_0, window_bounds = array<i64: 2, 8, 16>}, {pipeline_mode = #tpu.pipeline_mode<synchronous>, transform_indices = @transform_1, window_bounds = array<i64: 1, 8, 1>}, {pipeline_mode = #tpu.pipeline_mode<synchronous>, transform_indices = @transform_2, window_bounds = array<i64: 1, 8, 1>}, {pipeline_mode = #tpu.pipeline_mode<synchronous>, transform_indices = @transform_3, window_bounds = array<i64: 3, 8, 8>}, {transform_indices = @transform_4, window_bounds = array<i64: 2, 8, 16>}, {transform_indices = @transform_5, window_bounds = array<i64: 1, 8, 1>}, {transform_indices = @transform_6, window_bounds = array<i64: 1, 8, 1>}]} {
    %c0 = arith.constant 0 : index
    %c0_0 = arith.constant 0 : index
    %c0_1 = arith.constant 0 : index
    %0 = vector.load %arg1[%c0, %c0_0, %c0_1] : memref<2x8x16xbf16, #tpu.memory_space<vmem>>, vector<2x8x16xbf16>
    %1 = arith.extf %0 : vector<2x8x16xbf16> to vector<2x8x16xf32>
    %c0_2 = arith.constant 0 : index
    %c0_3 = arith.constant 0 : index
    %c0_4 = arith.constant 0 : index
    %2 = vector.load %arg2[%c0_2, %c0_3, %c0_4] : memref<1x8x1xf32, #tpu.memory_space<vmem>>, vector<1x8x1xf32>
    %3 = vector.broadcast %2 : vector<1x8x1xf32> to vector<2x8x16xf32>
    %4 = arith.mulf %1, %3 : vector<2x8x16xf32>
    %c0_5 = arith.constant 0 : index
    %c0_6 = arith.constant 0 : index
    %c0_7 = arith.constant 0 : index
    %5 = vector.load %arg3[%c0_5, %c0_6, %c0_7] : memref<1x8x1xf32, #tpu.memory_space<vmem>>, vector<1x8x1xf32>
    %6 = vector.broadcast %5 : vector<1x8x1xf32> to vector<2x8x16xf32>
    %7 = arith.addf %4, %6 : vector<2x8x16xf32>
    %cst = arith.constant 0.000000e+00 : f32
    %8 = vector.broadcast %cst : f32 to vector<2x8x16xf32>
    %9 = arith.maximumf %7, %8 : vector<2x8x16xf32>
    %10 = arith.truncf %9 : vector<2x8x16xf32> to vector<2x8x16xbf16>
    %cst_8 = arith.constant 0.000000e+00 : bf16
    %11 = vector.broadcast %cst_8 : bf16 to vector<2x8x1xbf16>
    %12 = vector.extract_strided_slice %10 {offsets = [0, 0, 0], sizes = [2, 8, 15], strides = [1, 1, 1]} : vector<2x8x16xbf16> to vector<2x8x15xbf16>
    %13 = tpu.concatenate %11, %12 in 2 : vector<2x8x1xbf16>, vector<2x8x15xbf16> -> vector<2x8x16xbf16>
    %14 = vector.extract_strided_slice %10 {offsets = [0, 0, 1], sizes = [2, 8, 15], strides = [1, 1, 1]} : vector<2x8x16xbf16> to vector<2x8x15xbf16>
    %15 = tpu.concatenate %14, %11 in 2 : vector<2x8x15xbf16>, vector<2x8x1xbf16> -> vector<2x8x16xbf16>
    %c0_9 = arith.constant 0 : index
    %c0_10 = arith.constant 0 : index
    %c0_11 = arith.constant 0 : index
    %16 = vector.load %arg4[%c0_9, %c0_10, %c0_11] : memref<3x8x8xbf16, #tpu.memory_space<vmem>>, vector<1x8x8xbf16>
    %17 = vector.shape_cast %16 : vector<1x8x8xbf16> to vector<8x8xbf16>
    %18 = vector.shape_cast %17 : vector<8x8xbf16> to vector<1x8x8xbf16>
    %19 = vector.broadcast %18 : vector<1x8x8xbf16> to vector<2x8x8xbf16>
    %cst_12 = arith.constant dense<0.000000e+00> : vector<2x8x16xf32>
    %20 = tpu.matmul %19, %13, %cst_12 {dimension_numbers = #tpu.dot_dimension_numbers<[2], [1], [1], [2], [0, 0, 0, 1, 1, 2], [0], [0]>} : vector<2x8x8xbf16>, vector<2x8x16xbf16>, vector<2x8x16xf32> -> vector<2x8x16xf32>
    %c1 = arith.constant 1 : index
    %c0_13 = arith.constant 0 : index
    %c0_14 = arith.constant 0 : index
    %21 = vector.load %arg4[%c1, %c0_13, %c0_14] : memref<3x8x8xbf16, #tpu.memory_space<vmem>>, vector<1x8x8xbf16>
    %22 = vector.shape_cast %21 : vector<1x8x8xbf16> to vector<8x8xbf16>
    %23 = vector.shape_cast %22 : vector<8x8xbf16> to vector<1x8x8xbf16>
    %24 = vector.broadcast %23 : vector<1x8x8xbf16> to vector<2x8x8xbf16>
    %cst_15 = arith.constant dense<0.000000e+00> : vector<2x8x16xf32>
    %25 = tpu.matmul %24, %10, %cst_15 {dimension_numbers = #tpu.dot_dimension_numbers<[2], [1], [1], [2], [0, 0, 0, 1, 1, 2], [0], [0]>} : vector<2x8x8xbf16>, vector<2x8x16xbf16>, vector<2x8x16xf32> -> vector<2x8x16xf32>
    %26 = arith.addf %20, %25 : vector<2x8x16xf32>
    %c2 = arith.constant 2 : index
    %c0_16 = arith.constant 0 : index
    %c0_17 = arith.constant 0 : index
    %27 = vector.load %arg4[%c2, %c0_16, %c0_17] : memref<3x8x8xbf16, #tpu.memory_space<vmem>>, vector<1x8x8xbf16>
    %28 = vector.shape_cast %27 : vector<1x8x8xbf16> to vector<8x8xbf16>
    %29 = vector.shape_cast %28 : vector<8x8xbf16> to vector<1x8x8xbf16>
    %30 = vector.broadcast %29 : vector<1x8x8xbf16> to vector<2x8x8xbf16>
    %cst_18 = arith.constant dense<0.000000e+00> : vector<2x8x16xf32>
    %31 = tpu.matmul %30, %15, %cst_18 {dimension_numbers = #tpu.dot_dimension_numbers<[2], [1], [1], [2], [0, 0, 0, 1, 1, 2], [0], [0]>} : vector<2x8x8xbf16>, vector<2x8x16xbf16>, vector<2x8x16xf32> -> vector<2x8x16xf32>
    %32 = arith.addf %26, %31 : vector<2x8x16xf32>
    %33 = arith.truncf %32 : vector<2x8x16xf32> to vector<2x8x16xbf16>
    %c0_19 = arith.constant 0 : index
    %c0_20 = arith.constant 0 : index
    %c0_21 = arith.constant 0 : index
    %34 = vector.load %arg5[%c0_19, %c0_20, %c0_21] : memref<2x8x16xbf16, #tpu.memory_space<vmem>>, vector<2x8x16xbf16>
    tpu.vector_store %arg5[%c0_19, %c0_20, %c0_21], %33 {strides = array<i32>} : memref<2x8x16xbf16, #tpu.memory_space<vmem>>, vector<2x8x16xbf16>,
    %cst_22 = arith.constant dense<0.000000e+00> : vector<8xf32>
    %35 = vector.multi_reduction <add>, %32, %cst_22 [0, 2] : vector<2x8x16xf32> to vector<8xf32>
    %36 = vector.shape_cast %35 : vector<8xf32> to vector<1x8x1xf32>
    %37 = arith.mulf %32, %32 : vector<2x8x16xf32>
    %cst_23 = arith.constant dense<0.000000e+00> : vector<8xf32>
    %38 = vector.multi_reduction <add>, %37, %cst_23 [0, 2] : vector<2x8x16xf32> to vector<8xf32>
    %39 = vector.shape_cast %38 : vector<8xf32> to vector<1x8x1xf32>
    %c0_24 = arith.constant 0 : index
    %c0_25 = arith.constant 0 : index
    %c0_26 = arith.constant 0 : index
    %40 = vector.load %arg6[%c0_24, %c0_25, %c0_26] : memref<1x8x1xf32, #tpu.memory_space<vmem>>, vector<1x8x1xf32>
    tpu.vector_store %arg6[%c0_24, %c0_25, %c0_26], %36 {strides = array<i32>} : memref<1x8x1xf32, #tpu.memory_space<vmem>>, vector<1x8x1xf32>,
    %c0_27 = arith.constant 0 : index
    %c0_28 = arith.constant 0 : index
    %c0_29 = arith.constant 0 : index
    %41 = vector.load %arg7[%c0_27, %c0_28, %c0_29] : memref<1x8x1xf32, #tpu.memory_space<vmem>>, vector<1x8x1xf32>
    tpu.vector_store %arg7[%c0_27, %c0_28, %c0_29], %39 {strides = array<i32>} : memref<1x8x1xf32, #tpu.memory_space<vmem>>, vector<1x8x1xf32>,
    return
  }
  func.func @transform_0(%arg0: i32) -> (i32, i32, i32) {
    %c0_i32 = arith.constant 0 : i32
    %c0_i32_0 = arith.constant 0 : i32
    %c0_i32_1 = arith.constant 0 : i32
    return %arg0, %c0_i32, %c0_i32_0 : i32, i32, i32
  }
  func.func @transform_1(%arg0: i32) -> (i32, i32, i32) {
    %c0_i32 = arith.constant 0 : i32
    %c0_i32_0 = arith.constant 0 : i32
    %c0_i32_1 = arith.constant 0 : i32
    %c0_i32_2 = arith.constant 0 : i32
    return %c0_i32, %c0_i32_0, %c0_i32_1 : i32, i32, i32
  }
  func.func @transform_2(%arg0: i32) -> (i32, i32, i32) {
    %c0_i32 = arith.constant 0 : i32
    %c0_i32_0 = arith.constant 0 : i32
    %c0_i32_1 = arith.constant 0 : i32
    %c0_i32_2 = arith.constant 0 : i32
    return %c0_i32, %c0_i32_0, %c0_i32_1 : i32, i32, i32
  }
  func.func @transform_3(%arg0: i32) -> (i32, i32, i32) {
    %c0_i32 = arith.constant 0 : i32
    %c0_i32_0 = arith.constant 0 : i32
    %c0_i32_1 = arith.constant 0 : i32
    %c0_i32_2 = arith.constant 0 : i32
    return %c0_i32, %c0_i32_0, %c0_i32_1 : i32, i32, i32
  }
  func.func @transform_4(%arg0: i32) -> (i32, i32, i32) {
    %c0_i32 = arith.constant 0 : i32
    %c0_i32_0 = arith.constant 0 : i32
    %c0_i32_1 = arith.constant 0 : i32
    return %arg0, %c0_i32, %c0_i32_0 : i32, i32, i32
  }
  func.func @transform_5(%arg0: i32) -> (i32, i32, i32) {
    %c0_i32 = arith.constant 0 : i32
    %c0_i32_0 = arith.constant 0 : i32
    %c0_i32_1 = arith.constant 0 : i32
    return %arg0, %c0_i32, %c0_i32_0 : i32, i32, i32
  }
  func.func @transform_6(%arg0: i32) -> (i32, i32, i32) {
    %c0_i32 = arith.constant 0 : i32
    %c0_i32_0 = arith.constant 0 : i32
    %c0_i32_1 = arith.constant 0 : i32
    return %arg0, %c0_i32, %c0_i32_0 : i32, i32, i32
  }
}

</mosaic_0001>

<bundles_post_ra>
// kernel: residual_block.5
= control target key start
LH: loop header
LB: loop body
LE: loop exit
PB: predicated region body
PF: predicated region fallthrough
CT: control target
= control target key end

     0   :  { %v56_v0 = vmov 0   ;;  %vm43_vm0 = vcmask 130048   ;;  %s103_s1 = inlined_call_operand.vmem [shape: f32[1,8,1], index: 1, kind: input, shape index: {}]   ;;  %s104_s2 = inlined_call_operand.vmem [shape: f32[1,8,1], index: 2, kind: input, shape index: {}]   ;;  %s105_s0 = inlined_call_operand.vmem [shape: bf16[2,8,16], index: 0, kind: input, shape index: {}]   ;;  %s106_s3 = inlined_call_operand.vmem [shape: f32[2,8,16], index: 3, kind: input, shape index: {}]   ;;  %s107_s4 = inlined_call_operand.vmem [shape: f32[2,8,16], index: 4, kind: output, shape index: {}]  }
   0x1   :  { %55 = vset.pattern.permute.xlu0 %v56_v0  ;;  %v21_v1 = vld [vmem:[%s103_s1] sm:$0xff]  ;;  %v38_v10 = vld [vmem:[%s106_s3 + $0x8] sm:$0xff] }
   0x2   :  { %24 = vperm.xlu0 %55, %v21_v1   ;;  %v29_v2 = vld [vmem:[%s104_s2] sm:$0xff] }
   0x3   :  { %v51_v3 = vld [vmem:[%s105_s0] sm:$0xff]  }
   0x4   :  { %v52_v4 = vunpack.c.l.bf16 %v51_v3  ;;  %v53_v5 = vunpack.c.h.bf16 %v51_v3  ;;  %v37_v9 = vld [vmem:[%s106_s3] sm:$0xff] }
   0x6   :  { %32 = vperm.xlu0 %55, %v29_v2  }
  0x81   :  { %v25_v6 = vpop.permute.xlu0 %24 }
  0x82   :  { %v27_v7 = vmul.f32 %v52_v4, %v25_v6  ;;  %v28_v8 = vmul.f32 %v53_v5, %v25_v6 }
  0x85   :  { %v33_v11 = vpop.permute.xlu0 %32 }
  0x86   :  { %v35_v12 = vadd.f32 %v33_v11, %v27_v7  ;;  %v36_v13 = vadd.f32 %v33_v11, %v28_v8 }
  0x88   :  { %v39_v14 = vadd.f32 %v37_v9, %v35_v12  ;;  %v40_v15 = vadd.f32 %v38_v10, %v36_v13 }
  0x8a   :  { %v41_v16 = vmax.f32 %v39_v14, 0.0  ;;  %v42_v17 = vmax.f32 %v40_v15, 0.0 }
  0x8c   :  { %44 = vst.msk [vmem:[%s107_s4] sm:$0xff] %vm43_vm0, %v41_v16  ;;  %45 = vst.msk [vmem:[%s107_s4 + $0x8] sm:$0xff] %vm43_vm0, %v42_v17 }

// kernel: residual_block.3
= control target key start
LH: loop header
LB: loop body
LE: loop exit
PB: predicated region body
PF: predicated region fallthrough
CT: control target
= control target key end

     0   :  { %v420_v2 = vmov 0.0   ;;  %vm47_vm0 = vcmask 1043456   ;;  %vm421_vm1 = vmmov 0   ;;  %s422_s19 = smov 1   ;;  %s423_s20 = smov 127   ;;  %vm43_vm2 = vcmask 64512   ;;  %s500_s0 = inlined_call_operand.vmem [shape: f32[2,8,16], index: 0, kind: input, shape index: {}]   ;;  %s501_s1 = inlined_call_operand.vmem [shape: bf16[3,8,8], index: 1, kind: input, shape index: {}]   ;;  %s502_s2 = inlined_call_operand.vmem [shape: bf16[2,8,16], index: 2, kind: output, shape index: {0}]   ;;  %s503_s3 = inlined_call_operand.vmem [shape: f32[1,8,1], index: 3, kind: output, shape index: {1}]   ;;  %s504_s4 = inlined_call_operand.vmem [shape: f32[1,8,1], index: 4, kind: output, shape index: {2}]  }
   0x1   :  { %v15_v0 = vld [vmem:[%s500_s0] sm:$0xff]  ;;  %v16_v1 = vld [vmem:[%s500_s0 + $0x8] sm:$0xff]  ;;  %364 = vmatprep.subr.bf16.mxu0 %v420_v2  ;;  %366 = vmatprep.mubr.msk.bf16.mxu0 %vm421_vm1, %v420_v2  ;;  %vm25_vm3 = vcmask 7168   ;;  %vm35_vm4 = vcmask 121856   ;;  %vm314_vm5 = vcmask 125952   ;;  %vm317_vm6 = vcmask 130048  }
   0x2   :  { %v17_v3 = vpack.c.bf16 %v15_v0, %v15_v0  ;;  %v18_v4 = vpack.c.bf16 %v16_v1, %v16_v1  ;;  %370 = vmatprep.subr.bf16.mxu1 %v420_v2  ;;  %372 = vmatprep.mubr.msk.bf16.mxu1 %vm421_vm1, %v420_v2  ;;  %v344_v7 = vld [vmem:[%s501_s1 + $0x4] sm:$0xf]  ;;  %v40_v13 = vld [vmem:[%s501_s1] sm:$0xf]  ;;  %v349_v21 = vld [vmem:[%s501_s1 + $0x8] sm:$0xf] }
   0x4   :  { %21 = vrot.lane.b32.xlu0 %v17_v3, %s422_s19  ;;  %31 = vrot.lane.b32.xlu1 %v17_v3, %s423_s20  ;;  %v49_v5 = vsel %vm47_vm0, %v17_v3, 0  ;;  %v92_v6 = vsel %vm47_vm0, %v18_v4, 0 }
   0x5   :  { %365 = vmatpush3.bf16.msra.mxu0 %v49_v5  ;;  %371 = vmatpush3.bf16.msra.mxu1 %v92_v6 }
   0x6   :  { %376 = vmatprep.subr.bf16.mxu0 %v420_v2  ;;  %382 = vmatprep.subr.bf16.mxu1 %v420_v2 }
   0x8   :  { %23 = vrot.lane.b32.xlu0 %v18_v4, %s422_s19  ;;  %33 = vrot.lane.b32.xlu1 %v18_v4, %s423_s20 }
   0x9   :  { %367 = vmatmul.mubr.msk.bf16.vlgmr.msra.gmra.mrb[0].mxu0 %vm43_vm2, %v344_v7  ;;  %373 = vmatmul.mubr.msk.bf16.vlgmr.msra.gmra.mrb[0].mxu1 %vm43_vm2, %v344_v7 }
   0xa   :  { %378 = vmatprep.mubr.msk.bf16.mxu0 %vm421_vm1, %v420_v2  ;;  %384 = vmatprep.mubr.msk.bf16.mxu1 %vm421_vm1, %v420_v2 }
  0x76   :  { %v22_v8 = vpop.permute.xlu0 %21  ;;  %v32_v9 = vpop.permute.xlu1 %31 }
  0x77   :  { %v28_v10 = vsel %vm25_vm3, 0, %v22_v8  ;;  %v37_v11 = vsel %vm35_vm4, %v32_v9, 0 }
  0x78   :  { %v137_v12 = vsel %vm47_vm0, %v28_v10, 0  ;;  %v226_v15 = vsel %vm47_vm0, %v37_v11, 0 }
  0x79   :  { %377 = vmatpush3.bf16.msra.mxu0 %v137_v12 }
  0x7a   :  { %v24_v14 = vpop.permute.xlu0 %23  ;;  %388 = vmatprep.subr.bf16.mxu0 %v420_v2  ;;  %v34_v16 = vpop.permute.xlu1 %33 }
  0x7b   :  { %v30_v17 = vsel %vm25_vm3, 0, %v24_v14  ;;  %v39_v18 = vsel %vm35_vm4, %v34_v16, 0 }
  0x7c   :  { %v179_v19 = vsel %vm47_vm0, %v30_v17, 0  ;;  %379 = vmatmul.mubr.msk.bf16.vlgmr.msra.gmra.mrb[0].mxu0 %vm43_vm2, %v40_v13  ;;  %v268_v20 = vsel %vm47_vm0, %v39_v18, 0 }
  0x7d   :  { %383 = vmatpush3.bf16.msra.mxu1 %v179_v19  ;;  %389 = vmatpush3.bf16.msra.mxu0 %v226_v15 }
  0x7e   :  { %390 = vmatprep.mubr.msk.bf16.mxu0 %vm421_vm1, %v420_v2  ;;  %394 = vmatprep.subr.bf16.mxu1 %v420_v2 }
  0x80   :  { %385 = vmatmul.mubr.msk.bf16.vlgmr.msra.gmra.mrb[0].mxu1 %vm43_vm2, %v40_v13 }
  0x81   :  { %395 = vmatpush3.bf16.msra.mxu1 %v268_v20  ;;  %396 = vmatprep.mubr.msk.bf16.mxu1 %vm421_vm1, %v420_v2 }
  0x88   :  { %391 = vmatmul.mubr.msk.bf16.vlgmr.msra.gmra.mrb[0].mxu0 %vm43_vm2, %v349_v21 }
  0x8c   :  { %397 = vmatmul.mubr.msk.bf16.vlgmr.msra.gmra.mrb[0].mxu1 %vm43_vm2, %v349_v21 }
 0x15b   :  { %v262_v22 = vpop.f32.mrb[0].mxu0 }
 0x15c   :  { %v312_v23 = vpack.c.bf16 %v262_v22, %v262_v22  ;;  %v392_v24 = vpop.f32.mrb[1].mxu0  ;;  %v323_v26 = vmul.f32 %v262_v22, %v262_v22  ;;  %v318_v32 = vsel %vm317_vm6, %v262_v22, 0.0 }
 0x15d   :  { %v265_v25 = vpop.f32.mrb[2].mxu0 }
 0x15e   :  { %315 = vst.msk [vmem:[%s502_s2] sm:$0xf] %vm314_vm5, %v312_v23  ;;  %v393_v27 = vpop.f32.mrb[3].mxu0  ;;  %v325_v37 = vsel %vm317_vm6, %v323_v26, 0.0 }
 0x15f   :  { %v304_v28 = vpop.f32.mrb[0].mxu1 }
 0x160   :  { %v313_v29 = vpack.c.bf16 %v304_v28, %v304_v28  ;;  %v324_v30 = vmul.f32 %v304_v28, %v304_v28  ;;  %v398_v31 = vpop.f32.mrb[1].mxu1  ;;  %v319_v33 = vsel %vm317_vm6, %v304_v28, 0.0 }
 0x161   :  { %v307_v34 = vpop.f32.mrb[2].mxu1  ;;  %v320_v35 = vadd.f32 %v319_v33, %v318_v32 }
 0x162   :  { %316 = vst.msk [vmem:[%s502_s2 + $0x4] sm:$0xf] %vm314_vm5, %v313_v29  ;;  %v399_v36 = vpop.f32.mrb[3].mxu1  ;;  %v326_v38 = vsel %vm317_vm6, %v324_v30, 0.0 }
 0x163   :  { %321 = vadd.xlane.f32.xlu0 %v320_v35  ;;  %v327_v39 = vadd.f32 %v326_v38, %v325_v37 }
 0x165   :  { %328 = vadd.xlane.f32.xlu1 %v327_v39 }
 0x1f0   :  { %v322_v40 = vpop.xlane.xlu0 %321 }
 0x1f1   :  { %330 = vst.msk [vmem:[%s503_s3] sm:$0xff] %vm25_vm3, %v322_v40 }
 0x1f2   :  { %v329_v41 = vpop.xlane.xlu1 %328 }
 0x1f3   :  { %331 = vst.msk [vmem:[%s504_s4] sm:$0xff] %vm25_vm3, %v329_v41 }

// kernel: residual_block.4
= control target key start
LH: loop header
LB: loop body
LE: loop exit
PB: predicated region body
PF: predicated region fallthrough
CT: control target
= control target key end

     0   :  { %v452_v0 = vmov 0   ;;  %v453_v3 = vmov 0.0   ;;  %vm454_vm0 = vmmov 0   ;;  %vm73_vm1 = vcmask 1043456   ;;  %s456_s26 = smov 1   ;;  %s560_s1 = inlined_call_operand.vmem [shape: f32[1,8,1], index: 1, kind: input, shape index: {}]   ;;  %s561_s2 = inlined_call_operand.vmem [shape: f32[1,8,1], index: 2, kind: input, shape index: {}]   ;;  %s562_s0 = inlined_call_operand.vmem [shape: bf16[2,8,16], index: 0, kind: input, shape index: {}]   ;;  %s563_s3 = inlined_call_operand.vmem [shape: bf16[3,8,8], index: 3, kind: input, shape index: {}]   ;;  %s564_s4 = inlined_call_operand.vmem [shape: bf16[2,8,16], index: 4, kind: output, shape index: {0}]   ;;  %s565_s5 = inlined_call_operand.vmem [shape: f32[1,8,1], index: 5, kind: output, shape index: {1}]   ;;  %s566_s6 = inlined_call_operand.vmem [shape: f32[1,8,1], index: 6, kind: output, shape index: {2}]  }
   0x1   :  { %451 = vset.pattern.permute.xlu0 %v452_v0  ;;  %v25_v1 = vld [vmem:[%s560_s1] sm:$0xff]  ;;  %394 = vmatprep.subr.bf16.mxu0 %v453_v3  ;;  %vm69_vm2 = vcmask 64512   ;;  %vm51_vm3 = vcmask 7168   ;;  %vm61_vm4 = vcmask 121856   ;;  %v375_v33 = vld [vmem:[%s563_s3 + $0x8] sm:$0xf] }
   0x2   :  { %28 = vperm.xlu0 %451, %v25_v1   ;;  %v33_v2 = vld [vmem:[%s561_s2] sm:$0xff]  ;;  %400 = vmatprep.subr.bf16.mxu1 %v453_v3  ;;  %s455_s2 = smov 127   ;;  %vm340_vm5 = vcmask 125952   ;;  %vm343_vm6 = vcmask 130048  }
   0x3   :  { %396 = vmatprep.mubr.msk.bf16.mxu0 %vm454_vm0, %v453_v3  ;;  %402 = vmatprep.mubr.msk.bf16.mxu1 %vm454_vm0, %v453_v3  ;;  %v379_v4 = vld [vmem:[%s562_s0] sm:$0xff]  }
   0x4   :  { %v380_v5 = vunpack.c.l.bf16 %v379_v4  ;;  %v381_v6 = vunpack.c.h.bf16 %v379_v4  ;;  %v370_v19 = vld [vmem:[%s563_s3 + $0x4] sm:$0xf]  ;;  %v66_v25 = vld [vmem:[%s563_s3] sm:$0xf] }
   0x6   :  { %36 = vperm.xlu0 %451, %v33_v2  }
  0x81   :  { %v29_v7 = vpop.permute.xlu0 %28 }
  0x82   :  { %v31_v8 = vmul.f32 %v380_v5, %v29_v7  ;;  %v32_v9 = vmul.f32 %v381_v6, %v29_v7 }
  0x85   :  { %v37_v10 = vpop.permute.xlu0 %36 }
  0x86   :  { %v39_v11 = vadd.f32 %v37_v10, %v31_v8  ;;  %v40_v12 = vadd.f32 %v37_v10, %v32_v9 }
  0x88   :  { %v41_v13 = vmax.f32 %v39_v11, 0.0  ;;  %v42_v14 = vmax.f32 %v40_v12, 0.0 }
  0x8a   :  { %v43_v15 = vpack.c.bf16 %v41_v13, %v41_v13  ;;  %v44_v16 = vpack.c.bf16 %v42_v14, %v42_v14 }
  0x8c   :  { %57 = vrot.lane.b32.xlu0 %v43_v15, %s455_s2  ;;  %47 = vrot.lane.b32.xlu1 %v43_v15, %s456_s26  ;;  %v75_v17 = vsel %vm73_vm1, %v43_v15, 0  ;;  %v118_v18 = vsel %vm73_vm1, %v44_v16, 0 }
  0x8d   :  { %395 = vmatpush3.bf16.msra.mxu0 %v75_v17  ;;  %401 = vmatpush3.bf16.msra.mxu1 %v118_v18 }
  0x8e   :  { %406 = vmatprep.subr.bf16.mxu0 %v453_v3  ;;  %412 = vmatprep.subr.bf16.mxu1 %v453_v3 }
  0x90   :  { %49 = vrot.lane.b32.xlu1 %v44_v16, %s456_s26  ;;  %397 = vmatmul.mubr.msk.bf16.vlgmr.msra.gmra.mrb[0].mxu0 %vm69_vm2, %v370_v19 }
  0x91   :  { %403 = vmatmul.mubr.msk.bf16.vlgmr.msra.gmra.mrb[0].mxu1 %vm69_vm2, %v370_v19  ;;  %408 = vmatprep.mubr.msk.bf16.mxu0 %vm454_vm0, %v453_v3 }
  0x92   :  { %414 = vmatprep.mubr.msk.bf16.mxu1 %vm454_vm0, %v453_v3 }
  0x94   :  { %59 = vrot.lane.b32.xlu1 %v44_v16, %s455_s2 }
  0xfe   :  { %v58_v20 = vpop.permute.xlu0 %57  ;;  %v48_v21 = vpop.permute.xlu1 %47 }
  0xff   :  { %v54_v22 = vsel %vm51_vm3, 0, %v48_v21  ;;  %v63_v24 = vsel %vm61_vm4, %v58_v20, 0 }
 0x100   :  { %v163_v23 = vsel %vm73_vm1, %v54_v22, 0  ;;  %v252_v28 = vsel %vm73_vm1, %v63_v24, 0 }
 0x101   :  { %407 = vmatpush3.bf16.msra.mxu0 %v163_v23 }
 0x102   :  { %v50_v26 = vpop.permute.xlu1 %49  ;;  %418 = vmatprep.subr.bf16.mxu0 %v453_v3 }
 0x103   :  { %v56_v27 = vsel %vm51_vm3, 0, %v50_v26 }
 0x104   :  { %v205_v29 = vsel %vm73_vm1, %v56_v27, 0  ;;  %409 = vmatmul.mubr.msk.bf16.vlgmr.msra.gmra.mrb[0].mxu0 %vm69_vm2, %v66_v25 }
 0x105   :  { %413 = vmatpush3.bf16.msra.mxu1 %v205_v29  ;;  %419 = vmatpush3.bf16.msra.mxu0 %v252_v28 }
 0x106   :  { %v60_v30 = vpop.permute.xlu1 %59  ;;  %424 = vmatprep.subr.bf16.mxu1 %v453_v3  ;;  %420 = vmatprep.mubr.msk.bf16.mxu0 %vm454_vm0, %v453_v3 }
 0x107   :  { %v65_v31 = vsel %vm61_vm4, %v60_v30, 0 }
 0x108   :  { %v294_v32 = vsel %vm73_vm1, %v65_v31, 0  ;;  %415 = vmatmul.mubr.msk.bf16.vlgmr.msra.gmra.mrb[0].mxu1 %vm69_vm2, %v66_v25 }
 0x109   :  { %425 = vmatpush3.bf16.msra.mxu1 %v294_v32  ;;  %426 = vmatprep.mubr.msk.bf16.mxu1 %vm454_vm0, %v453_v3 }
 0x110   :  { %421 = vmatmul.mubr.msk.bf16.vlgmr.msra.gmra.mrb[0].mxu0 %vm69_vm2, %v375_v33 }
 0x114   :  { %427 = vmatmul.mubr.msk.bf16.vlgmr.msra.gmra.mrb[0].mxu1 %vm69_vm2, %v375_v33 }
 0x1e3   :  { %v288_v34 = vpop.f32.mrb[0].mxu0 }
 0x1e4   :  { %v338_v35 = vpack.c.bf16 %v288_v34, %v288_v34  ;;  %v422_v36 = vpop.f32.mrb[1].mxu0  ;;  %v349_v38 = vmul.f32 %v288_v34, %v288_v34  ;;  %v344_v44 = vsel %vm343_vm6, %v288_v34, 0.0 }
 0x1e5   :  { %v291_v37 = vpop.f32.mrb[2].mxu0 }
 0x1e6   :  { %341 = vst.msk [vmem:[%s564_s4] sm:$0xf] %vm340_vm5, %v338_v35  ;;  %v423_v39 = vpop.f32.mrb[3].mxu0  ;;  %v351_v49 = vsel %vm343_vm6, %v349_v38, 0.0 }
 0x1e7   :  { %v330_v40 = vpop.f32.mrb[0].mxu1 }
 0x1e8   :  { %v339_v41 = vpack.c.bf16 %v330_v40, %v330_v40  ;;  %v350_v42 = vmul.f32 %v330_v40, %v330_v40  ;;  %v428_v43 = vpop.f32.mrb[1].mxu1  ;;  %v345_v45 = vsel %vm343_vm6, %v330_v40, 0.0 }
 0x1e9   :  { %v333_v46 = vpop.f32.mrb[2].mxu1  ;;  %v346_v47 = vadd.f32 %v345_v45, %v344_v44 }
 0x1ea   :  { %342 = vst.msk [vmem:[%s564_s4 + $0x4] sm:$0xf] %vm340_vm5, %v339_v41  ;;  %v429_v48 = vpop.f32.mrb[3].mxu1  ;;  %v352_v50 = vsel %vm343_vm6, %v350_v42, 0.0 }
 0x1eb   :  { %347 = vadd.xlane.f32.xlu0 %v346_v47  ;;  %v353_v51 = vadd.f32 %v352_v50, %v351_v49 }
 0x1ed   :  { %354 = vadd.xlane.f32.xlu1 %v353_v51 }
 0x278   :  { %v348_v52 = vpop.xlane.xlu0 %347 }
 0x279   :  { %356 = vst.msk [vmem:[%s565_s5] sm:$0xff] %vm51_vm3, %v348_v52 }
 0x27a   :  { %v355_v53 = vpop.xlane.xlu1 %354 }
 0x27b   :  { %357 = vst.msk [vmem:[%s566_s6] sm:$0xff] %vm51_vm3, %v355_v53 }

</bundles_post_ra>
